<compile_context>
chip_gen: v5e
topology: v5e:2x2
jax: 0.10.0
libtpu: 0.0.40
codegen_flags: <defaults>
</compile_context>

<pallas_src>
import functools

import jax
import jax.numpy as jnp
from jax.experimental import pallas as pl
from jax.experimental.pallas import tpu as pltpu


# --------------------------------------------------------------------------
# Single-pass fused kernel: pool + gate + rescale, TB batch elements per step
# --------------------------------------------------------------------------
def _se_fused_kernel(x_ref, w1t_ref, b1_ref, w2t_ref, b2_ref, o_ref, *, inv_hw):
    # x_ref: (TB, C, HW) block; weights are resident (same block every step).
    x = x_ref[...]                                   # native dtype (f32 / bf16)

    # Squeeze: global average pool over the spatial (lane) axis, f32 accumulate.
    # (Optional MXU route: x @ ones(HW,1); kept as a lane reduce since the
    #  kernel is HBM-bound and the XLU has plenty of slack here.)
    pooled = jnp.sum(x.astype(jnp.float32), axis=2) * inv_hw     # (TB, C)

    # reduce 1x1 conv (C -> Crd) + ReLU, then expand (Crd -> C) + sigmoid.
    h = jnp.dot(pooled, w1t_ref[...], preferred_element_type=jnp.float32)
    h = jnp.maximum(h + b1_ref[...], 0.0)                        # (TB, Crd)
    s = jnp.dot(h, w2t_ref[...], preferred_element_type=jnp.float32)
    s = jax.nn.sigmoid(s + b2_ref[...])                          # (TB, C) f32

    # Excite: rescale in the input dtype (keeps bf16 stores bf16).
    gate = s[:, :, None].astype(x.dtype)                         # (TB, C, 1)
    o_ref[...] = (x * gate).astype(o_ref.dtype)


# --------------------------------------------------------------------------
# Two-phase fallback: phase 1 = pooled sum + gate, phase 2 = tiled rescale
# --------------------------------------------------------------------------
def _se_gate_kernel(x_ref, w1t_ref, b1_ref, w2t_ref, b2_ref, s_ref, acc_ref,
                    *, inv_hw, hw, thw):
    # grid = (B // TB, num_spatial_tiles); spatial axis is last ("arbitrary").
    j = pl.program_id(1)

    @pl.when(j == 0)
    def _():
        acc_ref[...] = jnp.zeros_like(acc_ref)

    x = x_ref[...].astype(jnp.float32)               # (TB, C, THW)
    if hw % thw != 0:
        # Mask out-of-range lanes of the ragged last spatial tile so they do
        # not pollute the pooled sum.
        lane = jax.lax.broadcasted_iota(jnp.int32, x.shape, dimension=2)
        x = jnp.where(lane < (hw - j * thw), x, 0.0)
    acc_ref[...] += jnp.sum(x, axis=2)               # (TB, C) f32

    @pl.when(j == pl.num_programs(1) - 1)
    def _():
        pooled = acc_ref[...] * inv_hw
        h = jnp.dot(pooled, w1t_ref[...], preferred_element_type=jnp.float32)
        h = jnp.maximum(h + b1_ref[...], 0.0)
        g = jnp.dot(h, w2t_ref[...], preferred_element_type=jnp.float32)
        g = jax.nn.sigmoid(g + b2_ref[...])          # (TB, C) f32
        s_ref[...] = g[:, :, None]                   # (TB, C, 1)


def _se_scale_kernel(x_ref, s_ref, o_ref):
    # x_ref: (TB, C, THW), s_ref: (TB, C, 1) f32 gate.
    x = x_ref[...]
    o_ref[...] = (x * s_ref[...].astype(x.dtype)).astype(o_ref.dtype)


# --------------------------------------------------------------------------
# Wrapper
# --------------------------------------------------------------------------
def se_block(x_nchw, w_reduce, b_reduce, w_expand, b_expand,
             *, block_budget_bytes=8 * 1024 * 1024):
    """SEBlock forward.

    x_nchw:   (B, C, H, W)
    w_reduce: (Crd, C),  b_reduce: (Crd,)   -- Conv2d(C, Crd, 1)
    w_expand: (C, Crd),  b_expand: (C,)     -- Conv2d(Crd, C, 1)
    block_budget_bytes: target per-grid-step VMEM footprint (conservative for
    v7x's 64 MiB; v5e/v6e with 128 MiB tolerate more but this already reaches
    HBM roofline for realistic shapes).
    """
    B, C, H, W = x_nchw.shape
    Crd = w_reduce.shape[0]
    HW = H * W
    itemsize = jnp.dtype(x_nchw.dtype).itemsize

    x_flat = x_nchw.reshape(B, C, HW)
    # Pre-transpose weights so the kernel does (TB,C)@(C,Crd) and (TB,Crd)@(Crd,C).
    w1t = jnp.transpose(w_reduce).astype(jnp.float32)   # (C, Crd)
    w2t = jnp.transpose(w_expand).astype(jnp.float32)   # (Crd, C)
    b1 = b_reduce.reshape(1, Crd).astype(jnp.float32)
    b2 = b_expand.reshape(1, C).astype(jnp.float32)
    weight_bytes = 4 * (2 * C * Crd + C + Crd)
    inv_hw = 1.0 / float(HW)

    # Per batch element: in + out blocks (each double-buffered by the pipeline)
    # plus an f32 working copy for the pooled reduction.
    per_b_bytes = C * HW * (4 * itemsize + 4)

    if per_b_bytes <= block_budget_bytes:
        # -------------------- single-pass fused path -----------------------
        tb = max(1, min(B, block_budget_bytes // per_b_bytes))
        if B >= 2:
            tb = min(tb, B // 2)      # keep >= 2 parallel steps for v7x's 2 TCs
        while B % tb:
            tb -= 1

        vmem_limit = int(min(48 * 1024 * 1024,
                             max(16 * 1024 * 1024,
                                 2 * (tb * per_b_bytes + 2 * weight_bytes))))

        kernel = functools.partial(_se_fused_kernel, inv_hw=inv_hw)
        out = pl.pallas_call(
            kernel,
            out_shape=jax.ShapeDtypeStruct((B, C, HW), x_nchw.dtype),
            grid_spec=pltpu.PrefetchScalarGridSpec(
                num_scalar_prefetch=0,
                grid=(B // tb,),
                in_specs=[
                    pl.BlockSpec((tb, C, HW), lambda i: (i, 0, 0)),
                    pl.BlockSpec((C, Crd), lambda i: (0, 0)),
                    pl.BlockSpec((1, Crd), lambda i: (0, 0)),
                    pl.BlockSpec((Crd, C), lambda i: (0, 0)),
                    pl.BlockSpec((1, C), lambda i: (0, 0)),
                ],
                out_specs=pl.BlockSpec((tb, C, HW), lambda i: (i, 0, 0)),
            ),
            compiler_params=pltpu.CompilerParams(
                dimension_semantics=("parallel",),
                vmem_limit_bytes=vmem_limit),
        )(x_flat, w1t, b1, w2t, b2)
        return out.reshape(B, C, H, W)

    # ------------------------ two-phase fallback ---------------------------
    # (C, HW) slab too large for the block budget: tile the spatial axis with
    # lane-dense (multiple-of-128) tiles; pool+gate first, then rescale.
    tb = 1
    thw = 128
    while (thw * 2 <= HW) and (C * (thw * 2) * (4 * itemsize + 4)
                               <= block_budget_bytes):
        thw *= 2
    n_sp = pl.cdiv(HW, thw)

    per_tile_bytes = tb * C * thw * (4 * itemsize + 4)
    vmem_limit = int(min(48 * 1024 * 1024,
                         max(16 * 1024 * 1024,
                             2 * (per_tile_bytes + 2 * weight_bytes))))

    # Phase 1: pooled sum over spatial tiles (reduction axis last, "arbitrary"),
    # gate computed and written once on the last tile.
    gate_kernel = functools.partial(_se_gate_kernel, inv_hw=inv_hw, hw=HW, thw=thw)
    s = pl.pallas_call(
        gate_kernel,
        out_shape=jax.ShapeDtypeStruct((B, C, 1), jnp.float32),
        grid_spec=pltpu.PrefetchScalarGridSpec(
            num_scalar_prefetch=0,
            grid=(B // tb, n_sp),
            in_specs=[
                pl.BlockSpec((tb, C, thw), lambda i, j: (i, 0, j)),
                pl.BlockSpec((C, Crd), lambda i, j: (0, 0)),
                pl.BlockSpec((1, Crd), lambda i, j: (0, 0)),
                pl.BlockSpec((Crd, C), lambda i, j: (0, 0)),
                pl.BlockSpec((1, C), lambda i, j: (0, 0)),
            ],
            out_specs=pl.BlockSpec((tb, C, 1), lambda i, j: (i, 0, 0)),
            scratch_shapes=[pltpu.VMEM((tb, C), jnp.float32)],
        ),
        compiler_params=pltpu.CompilerParams(
            dimension_semantics=("parallel", "arbitrary"),
            vmem_limit_bytes=vmem_limit),
    )(x_flat, w1t, b1, w2t, b2)

    # Phase 2: spatially tiled rescale, fully parallel grid (feeds both v7x TCs).
    out = pl.pallas_call(
        _se_scale_kernel,
        out_shape=jax.ShapeDtypeStruct((B, C, HW), x_nchw.dtype),
        grid_spec=pltpu.PrefetchScalarGridSpec(
            num_scalar_prefetch=0,
            grid=(B // tb, n_sp),
            in_specs=[
                pl.BlockSpec((tb, C, thw), lambda i, j: (i, 0, j)),
                pl.BlockSpec((tb, C, 1), lambda i, j: (i, 0, 0)),
            ],
            out_specs=pl.BlockSpec((tb, C, thw), lambda i, j: (i, 0, j)),
        ),
        compiler_params=pltpu.CompilerParams(
            dimension_semantics=("parallel", "parallel"),
            vmem_limit_bytes=vmem_limit),
    )(x_flat, s)
    return out.reshape(B, C, H, W)


def se_block_ref(x, w_reduce, b_reduce, w_expand, b_expand):
    """Pure-JAX reference mirroring the PyTorch forward."""
    xf = x.astype(jnp.float32)
    pooled = jnp.mean(xf, axis=(2, 3))                                  # (B, C)
    h = jnp.maximum(pooled @ w_reduce.T.astype(jnp.float32)
                    + b_reduce.astype(jnp.float32), 0.0)                # (B, Crd)
    s = jax.nn.sigmoid(h @ w_expand.T.astype(jnp.float32)
                       + b_expand.astype(jnp.float32))                  # (B, C)
    return xf * s[:, :, None, None]


if __name__ == "__main__":
    key = jax.random.PRNGKey(0)
    kx, k1, k2, k3, k4 = jax.random.split(key, 5)

    # Shapes consistent with the module; rd_ratio=0.0625 -> Crd = C // 16.
    B, C, H, W = 4, 32, 8, 8
    Crd = int(C * 0.0625)  # 2

    x = jax.random.normal(kx, (B, C, H, W), dtype=jnp.float32)
    # Conv2d weights are (out, in, 1, 1); keep the (out, in) slice.
    w_reduce = jax.random.normal(k1, (Crd, C), dtype=jnp.float32) * 0.1
    b_reduce = jax.random.normal(k2, (Crd,), dtype=jnp.float32) * 0.1
    w_expand = jax.random.normal(k3, (C, Crd), dtype=jnp.float32) * 0.1
    b_expand = jax.random.normal(k4, (C,), dtype=jnp.float32) * 0.1

    # --- test 1: single-pass fused path (TB=2 batch elems per grid step,
    #     grid of 2 parallel steps) --------------------------------------
    out = jax.block_until_ready(se_block(x, w_reduce, b_reduce, w_expand, b_expand))
    ref = se_block_ref(x, w_reduce, b_reduce, w_expand, b_expand)
    assert out.shape == (B, C, H, W)
    assert jnp.allclose(out, ref, atol=1e-5, rtol=1e-5), "fused path mismatch"

    # --- test 2: bf16 activations (bf16 excite multiply + bf16 stores,
    #     f32 pooling/gate math) -----------------------------------------
    x_bf = x.astype(jnp.bfloat16)
    out_bf = jax.block_until_ready(
        se_block(x_bf, w_reduce, b_reduce, w_expand, b_expand))
    ref_bf = se_block_ref(x_bf.astype(jnp.float32),
                          w_reduce, b_reduce, w_expand, b_expand)
    assert out_bf.dtype == jnp.bfloat16
    assert jnp.allclose(out_bf.astype(jnp.float32), ref_bf,
                        atol=5e-2, rtol=5e-2), "bf16 path mismatch"

    # --- test 3: two-phase (pool+gate, then lane-dense tiled rescale),
    #     forced by a tiny per-block VMEM budget --------------------------
    B2, C2, H2, W2 = 2, 32, 16, 16
    x2 = jax.random.normal(kx, (B2, C2, H2, W2), dtype=jnp.float32)
    out2 = jax.block_until_ready(
        se_block(x2, w_reduce, b_reduce, w_expand, b_expand,
                 block_budget_bytes=64 * 1024))
    ref2 = se_block_ref(x2, w_reduce, b_reduce, w_expand, b_expand)
    assert jnp.allclose(out2, ref2, atol=1e-5, rtol=1e-5), "two-phase mismatch"

    print("KERNEL_OK")
</pallas_src>

<mosaic_0001>
module attributes {stable_mosaic.version = 11 : i64} {
  func.func @_se_fused_kernel(%arg0: i32, %arg1: memref<2x32x64xf32, #tpu.memory_space<vmem>>, %arg2: memref<32x2xf32, #tpu.memory_space<vmem>>, %arg3: memref<1x2xf32, #tpu.memory_space<vmem>>, %arg4: memref<2x32xf32, #tpu.memory_space<vmem>>, %arg5: memref<1x32xf32, #tpu.memory_space<vmem>>, %arg6: memref<2x32x64xf32, #tpu.memory_space<vmem>>) attributes {dimension_semantics = [#tpu.dimension_semantics<parallel>], iteration_bounds = array<i64: 2>, scalar_prefetch = 0 : i64, scratch_operands = 0 : i64, tpu.core_type = #tpu.core_type<tc>, window_params = [{transform_indices = @transform_0, window_bounds = array<i64: 2, 32, 64>}, {pipeline_mode = #tpu.pipeline_mode<synchronous>, transform_indices = @transform_1, window_bounds = array<i64: 32, 2>}, {pipeline_mode = #tpu.pipeline_mode<synchronous>, transform_indices = @transform_2, window_bounds = array<i64: 1, 2>}, {pipeline_mode = #tpu.pipeline_mode<synchronous>, transform_indices = @transform_3, window_bounds = array<i64: 2, 32>}, {pipeline_mode = #tpu.pipeline_mode<synchronous>, transform_indices = @transform_4, window_bounds = array<i64: 1, 32>}, {transform_indices = @transform_5, window_bounds = array<i64: 2, 32, 64>}]} {
    %c0 = arith.constant 0 : index
    %c0_0 = arith.constant 0 : index
    %c0_1 = arith.constant 0 : index
    %0 = vector.load %arg1[%c0, %c0_0, %c0_1] : memref<2x32x64xf32, #tpu.memory_space<vmem>>, vector<2x32x64xf32>
    %cst = arith.constant dense<0.000000e+00> : vector<2x32xf32>
    %1 = vector.multi_reduction <add>, %0, %cst [2] : vector<2x32x64xf32> to vector<2x32xf32>
    %cst_2 = arith.constant 1.562500e-02 : f32
    %2 = vector.broadcast %cst_2 : f32 to vector<2x32xf32>
    %3 = arith.mulf %1, %2 : vector<2x32xf32>
    %c0_3 = arith.constant 0 : index
    %c0_4 = arith.constant 0 : index
    %4 = vector.load %arg2[%c0_3, %c0_4] : memref<32x2xf32, #tpu.memory_space<vmem>>, vector<32x2xf32>
    %cst_5 = arith.constant dense<0.000000e+00> : vector<2x2xf32>
    %5 = tpu.matmul %3, %4, %cst_5 {dimension_numbers = #tpu.dot_dimension_numbers<[1], [0], [0], [1], [0, 0, 1, 1], [], []>} : vector<2x32xf32>, vector<32x2xf32>, vector<2x2xf32> -> vector<2x2xf32>
    %c0_6 = arith.constant 0 : index
    %c0_7 = arith.constant 0 : index
    %6 = vector.load %arg3[%c0_6, %c0_7] : memref<1x2xf32, #tpu.memory_space<vmem>>, vector<1x2xf32>
    %7 = vector.broadcast %6 : vector<1x2xf32> to vector<2x2xf32>
    %8 = arith.addf %5, %7 : vector<2x2xf32>
    %cst_8 = arith.constant 0.000000e+00 : f32
    %9 = vector.broadcast %cst_8 : f32 to vector<2x2xf32>
    %10 = arith.maximumf %8, %9 : vector<2x2xf32>
    %c0_9 = arith.constant 0 : index
    %c0_10 = arith.constant 0 : index
    %11 = vector.load %arg4[%c0_9, %c0_10] : memref<2x32xf32, #tpu.memory_space<vmem>>, vector<2x32xf32>
    %cst_11 = arith.constant dense<0.000000e+00> : vector<2x32xf32>
    %12 = tpu.matmul %10, %11, %cst_11 {dimension_numbers = #tpu.dot_dimension_numbers<[1], [0], [0], [1], [0, 0, 1, 1], [], []>} : vector<2x2xf32>, vector<2x32xf32>, vector<2x32xf32> -> vector<2x32xf32>
    %c0_12 = arith.constant 0 : index
    %c0_13 = arith.constant 0 : index
    %13 = vector.load %arg5[%c0_12, %c0_13] : memref<1x32xf32, #tpu.memory_space<vmem>>, vector<1x32xf32>
    %14 = vector.broadcast %13 : vector<1x32xf32> to vector<2x32xf32>
    %15 = arith.addf %12, %14 : vector<2x32xf32>
    %16 = arith.negf %15 : vector<2x32xf32>
    %17 = math.exp %16 : vector<2x32xf32>
    %cst_14 = arith.constant 1.000000e+00 : f32
    %18 = vector.broadcast %cst_14 : f32 to vector<2x32xf32>
    %19 = arith.addf %18, %17 : vector<2x32xf32>
    %20 = arith.divf %18, %19 : vector<2x32xf32>
    %21 = vector.shape_cast %20 : vector<2x32xf32> to vector<2x32x1xf32>
    %22 = vector.broadcast %21 : vector<2x32x1xf32> to vector<2x32x64xf32>
    %23 = arith.mulf %0, %22 : vector<2x32x64xf32>
    %c0_15 = arith.constant 0 : index
    %c0_16 = arith.constant 0 : index
    %c0_17 = arith.constant 0 : index
    %24 = vector.load %arg6[%c0_15, %c0_16, %c0_17] : memref<2x32x64xf32, #tpu.memory_space<vmem>>, vector<2x32x64xf32>
    tpu.vector_store %arg6[%c0_15, %c0_16, %c0_17], %23 {strides = array<i32>} : memref<2x32x64xf32, #tpu.memory_space<vmem>>, vector<2x32x64xf32>,
    return
  }
  func.func @transform_0(%arg0: i32) -> (i32, i32, i32) {
    %c0_i32 = arith.constant 0 : i32
    %c0_i32_0 = arith.constant 0 : i32
    %c0_i32_1 = arith.constant 0 : i32
    return %arg0, %c0_i32, %c0_i32_0 : i32, i32, i32
  }
  func.func @transform_1(%arg0: i32) -> (i32, i32) {
    %c0_i32 = arith.constant 0 : i32
    %c0_i32_0 = arith.constant 0 : i32
    %c0_i32_1 = arith.constant 0 : i32
    return %c0_i32, %c0_i32_0 : i32, i32
  }
  func.func @transform_2(%arg0: i32) -> (i32, i32) {
    %c0_i32 = arith.constant 0 : i32
    %c0_i32_0 = arith.constant 0 : i32
    %c0_i32_1 = arith.constant 0 : i32
    return %c0_i32, %c0_i32_0 : i32, i32
  }
  func.func @transform_3(%arg0: i32) -> (i32, i32) {
    %c0_i32 = arith.constant 0 : i32
    %c0_i32_0 = arith.constant 0 : i32
    %c0_i32_1 = arith.constant 0 : i32
    return %c0_i32, %c0_i32_0 : i32, i32
  }
  func.func @transform_4(%arg0: i32) -> (i32, i32) {
    %c0_i32 = arith.constant 0 : i32
    %c0_i32_0 = arith.constant 0 : i32
    %c0_i32_1 = arith.constant 0 : i32
    return %c0_i32, %c0_i32_0 : i32, i32
  }
  func.func @transform_5(%arg0: i32) -> (i32, i32, i32) {
    %c0_i32 = arith.constant 0 : i32
    %c0_i32_0 = arith.constant 0 : i32
    %c0_i32_1 = arith.constant 0 : i32
    return %arg0, %c0_i32, %c0_i32_0 : i32, i32, i32
  }
}

</mosaic_0001>

<bundles_post_ra>
// kernel: tpu_custom_call.1
= control target key start
LH: loop header
LB: loop body
LE: loop exit
PB: predicated region body
PF: predicated region fallthrough
CT: control target
= control target key end

     0   :  { %10 = vsyncpa [#allocation3], 0  ;;  %s982_s0 = inlined_call_operand.hbm [shape: f32[4,32,64], index: 0, kind: input, shape index: {}]   ;;  %s983_s1 = inlined_call_operand.vmem [shape: f32[32,2], index: 1, kind: input, shape index: {}]   ;;  %s984_s2 = inlined_call_operand.vmem [shape: f32[1,2], index: 2, kind: input, shape index: {}]   ;;  %s985_s3 = inlined_call_operand.vmem [shape: f32[2,32], index: 3, kind: input, shape index: {}]   ;;  %s986_s4 = inlined_call_operand.vmem [shape: f32[1,32], index: 4, kind: input, shape index: {}]   ;;  %s987_s5 = inlined_call_operand.hbm [shape: f32[4,32,64], index: 5, kind: output, shape index: {}]  }
   0x1   :  { %12 = vsyncpa [#allocation3 + $0x1], 0 }
   0x2   :  { %13 = vsyncpa [#allocation4], 0 }
   0x3   :  { %15 = vsyncpa [#allocation4 + $0x1], 0  ;;  %s782_s18 = smov 0   ;;  %s784_s19 = smov 0  }
   0x4   :  { %s786_s20 = smov 0   ;;  %s788_s21 = smov 0  }
   0x5 LB: > { %s803_s22 = sadd.s32 4294967295, %s746_s21   ;;  %s561_s23 = sadd.s32 4294967294, %s746_s21   ;;  %s746_s21 = sphi %s788_s21, %s997_s21   ;;  %s742_s20 = sphi %s786_s20, %s996_s20   ;;  %s738_s19 = sphi %s784_s19, %s995_s19   ;;  %s734_s18 = sphi %s782_s18, %s994_s18  }
   0x6   : > { %s807_s24 = sadd.s32 1, %s746_s21   ;;  %s28_s25 = sadd.s32 1, %s742_s20 }
   0x7   : > { %s25_s26 = ssub.s32 %s746_s21, %s807_s24  ;;  %p35_p0 = scmp.ne.s32.totalorder %s742_s20, %s738_s19 }
   0x8   : > { %p26_p1 = scmp.eq.s32.totalorder %s25_s26, 0  ;;  %p36_p2 = scmp.eq.s32.totalorder %s746_s21, 0 }
   0x9   : > { %p41_p3 = scmp.ne.s32.totalorder %s738_s19, %s734_s18  ;;  %p42_p4 = scmp.eq.s32.totalorder %s803_s22, 0 }
   0xa   : > { %s819_s27 = scalar_select %p26_p1, %s742_s20, %s28_s25  }
   0xb   : > { %p821_p5 = por %p36_p2, %p35_p0  ;;  %p825_p6 = por %p42_p4, %p41_p3 }
   0xc   : > { %p149_p7 = scmp.eq.s32.totalorder %s803_s22, 1  ;;  %p155_p8 = scmp.eq.s32.totalorder %s561_s23, 1 }
   0xd   : > { %p597_p10 = scmp.lt.s32.totalorder %s746_s21, 2  ;;  %s187_s7 = sand.u32 1, %s742_s20  }
   0xe   : > { %p832_p11 = por %p149_p7, %p35_p0  ;;  %p836_p12 = por %p155_p8, %p41_p3 }
   0xf   : > { %s582_s8 = sshll.u32 %s746_s21, 6  ;;  %s564_s9 = sshll.u32 %s187_s7, 6 }
  0x10   : > { %s197_s12 = scalar_lea.hbm %s982_s0, %s582_s8  ;;  %s191_s14 = scalar_lea.vmem [#allocation2], %s564_s9 }
  0x11   : > { %s198_s13 = sshll.u32 %s197_s12, 4  ;;  %s200_s15 = sshll.u32 %s191_s14, 4  ;;  %s199_s13 = int_to_ptr.hbm [resolvable:$true] %s198_s13  ;;  %s201_s15 = int_to_ptr.vmem [resolvable:$true] %s200_s15 }
  0x12   : > { %p847_p13 = pnand %p597_p10, %p821_p5  ;;  %p568_p0 = scmp.ge.s32.totalorder %s746_s21, 1 }
  0x13   : > { %p208_p1 = scmp.lt.s32.totalorder %s746_s21, 3  ;;  %s188_s17 = scalar_lea.sflag [#allocation3], %s187_s7 }
  0x14   : > { %s650_s23 = sshra.s32 %s199_s13, 4  ;;  %p654_p3 = pneg %p847_p13  ;;  %s651_s23 = int_to_ptr.hbm [resolvable:$true] %s650_s23 }
  0x15   : > { %s652_s25 = scalar_lea.hbm %s651_s23, 64  ;;  %s657_s28 = scalar_lea.hbm %s982_s0, 128 }
  0x16   : > { %p653_p2 = scmp.ne.s32.totalorder %s651_s23, %s652_s25  ;;  %p658_p5 = scmp.lt.s32.totalorder %s651_s23, %s982_s0 }
  0x17   : > { %p659_p8 = scmp.lt.s32.totalorder %s657_s28, %s652_s25 }
  0x18   : > { %p655_p4 = pnand %p654_p3, %p653_p2 }
  0x19   : > { %p660_p10 = por %p659_p8, %p658_p5 }
  0x1a   : > { %p656_p7 = pneg %p655_p4 }
  0x1c   : > { %p661_p9 = pnand %p660_p10, %p656_p7 }
  0x1e   : > { %664 = shalt.err (!%p661_p9)
}
  0x1f   : > { %s748_s7 = smov 128   ;;  %s749_s11 = smov 8  }
  0x20   : > { %592 = dma.hbm_to_vmem [thread:$0]  (!%p847_p13), %s199_s13, 1024, %s201_s15, %s188_s17, %s748_s7, %s748_s7, %s749_s11  }
  0x21   : > { %p209_p2 = pnand %p568_p0, %p208_p1 }
  0x22   : > { %s868_s12 = sand.u32 (!%p209_p2), 1, %s738_s19  }
  0x23   : > { %212 = sbr.rel (%p209_p2) target bundleno = 623 (0x26f), region = 40  ;;  %s569_s14 = sshll.u32 (!%p209_p2), %s868_s12, 6 }
  0x24   : > { %s215_s23 = scalar_lea.sflag (!%p209_p2), [#allocation3], %s868_s12  ;;  %s218_s25 = scalar_lea.vmem (!%p209_p2), [#allocation2], %s569_s14 }
  0x28   : > { %725 = dma.done.wait (%p825_p6), %s215_s23, 1024  }
  0x29   : > { %727 = vsyncadd (%p825_p6), %s215_s23, 4294966272  ;;  %vm256_vm0 = vcmask 523264   ;;  %v878_v0 = vld [vmem:[%s218_s25 + $0x20] sm:$0xff]  ;;  %v882_v2 = vld [vmem:[%s218_s25 + $0x10] sm:$0xff]  ;;  %v305_v23 = vlaneseq  ;;  %vm310_vm1 = vcmask 130112   ;;  %vm314_vm2 = vcmask 195712  }
  0x2a   : > { %v880_v1 = vld [vmem:[%s218_s25] sm:$0xff]  ;;  %v269_v3 = vsel %vm256_vm0, %v878_v0, 0.0  ;;  %v263_v5 = vsel %vm256_vm0, %v882_v2, 0.0  ;;  %v890_v6 = vld [vmem:[%s218_s25 + $0x28] sm:$0xff]  ;;  %v894_v8 = vld [vmem:[%s218_s25 + $0x30] sm:$0xff]  ;;  %vm318_vm3 = vcmask 261312  }
  0x2b   : > { %v257_v4 = vsel %vm256_vm0, %v880_v1, 0.0  ;;  %270 = vadd.xlane.f32.xlu1 %v269_v3  ;;  %264 = vadd.xlane.f32.xlu2 %v263_v5  ;;  %v892_v7 = vld [vmem:[%s218_s25 + $0x8] sm:$0xff]  ;;  %v272_v9 = vsel %vm256_vm0, %v890_v6, 0.0  ;;  %v275_v11 = vsel %vm256_vm0, %v894_v8, 0.0  ;;  %v902_v12 = vld [vmem:[%s218_s25 + $0x38] sm:$0xff]  ;;  %v291_v17 = vld [vmem:[%s983_s1 + $0x10] sm:$0xff] }
  0x2c   : > { %258 = vadd.xlane.f32.xlu0 %v257_v4  ;;  %v260_v10 = vsel %vm256_vm0, %v892_v7, 0.0  ;;  %v904_v13 = vld [vmem:[%s218_s25 + $0x18] sm:$0xff]  ;;  %v278_v14 = vsel %vm256_vm0, %v902_v12, 0.0  ;;  %v290_v18 = vld [vmem:[%s983_s1 + $0x8] sm:$0xff]  ;;  %v289_v19 = vld [vmem:[%s983_s1] sm:$0xff]  ;;  %v306_v24 = vand.u32 127, %v305_v23 }
  0x2d   : > { %v266_v15 = vsel %vm256_vm0, %v904_v13, 0.0  ;;  %v292_v16 = vld [vmem:[%s983_s1 + $0x18] sm:$0xff]  ;;  %vm327_vm4 = vcmask 1041409   ;;  %vm329_vm5 = vcmask 261120   ;;  %v353_v56 = vld [vmem:[%s985_s3] sm:$0x3] }
  0x2e   : > { %344 = vmatpush.msra.mxu0 %v292_v16  ;;  %v308_v27 = vadd.s32 4294967288, %v306_v24  ;;  %v312_v36 = vadd.s32 4294967280, %v306_v24  ;;  %v316_v40 = vadd.s32 4294967272, %v306_v24  ;;  %vm362_vm6 = vcmask 1041408   ;;  %v644_v57 = vld [vmem:[%s984_s2] ss:$0 sm:$0xff] }
  0x2f   : > { %572 = vmatpush.msk.msra.mxu1 %vm362_vm6, %v353_v56  ;;  %vm358_vm7 = vcmask 15360   ;;  %v407_v61 = vshrl.u32 %v305_v23, 7  ;;  %v645_v3 = vld [vmem:[%s986_s4] ss:$0 sm:$0xff]  ;;  %s245_s29 = scalar_lea.vmem [#allocation5], %s569_s14  ;;  %s584_s14 = sshll.u32 %s803_s22, 6 }
  0x30   : > { %345 = vmatpush.msra.mxu0 %v291_v17  ;;  %s484_s16 = scalar_lea.hbm %s987_s5, %s584_s14  ;;  %s485_s17 = sshll.u32 %s245_s29, 4  ;;  %s486_s17 = int_to_ptr.vmem [resolvable:$true] %s485_s17 }
  0x31   : > { %635 = vset.pattern.permute.xlu2 %v407_v61  ;;  %v420_v62 = vadd.s32 16, %v407_v61  ;;  %v414_v63 = vadd.s32 8, %v407_v61  ;;  %s487_s26 = sshll.u32 %s484_s16, 4  ;;  %s472_s22 = scalar_lea.sflag [#allocation4], %s868_s12  ;;  %s488_s26 = int_to_ptr.hbm [resolvable:$true] %s487_s26 }
  0x32   : > { %346 = vmatpush.msra.mxu0 %v290_v18  ;;  %s694_s8 = sshra.s32 %s488_s26, 4  ;;  %s700_s7 = scalar_lea.hbm %s987_s5, 128  ;;  %s695_s8 = int_to_ptr.hbm [resolvable:$true] %s694_s8 }
  0x33   : > { %273 = vadd.xlane.f32.xlu1 %v272_v9  ;;  %276 = vadd.xlane.f32.xlu2 %v275_v11  ;;  %s696_s28 = scalar_lea.hbm %s695_s8, 64  ;;  %p701_p0 = scmp.lt.s32.totalorder %s695_s8, %s987_s5 }
  0x34   : > { %261 = vadd.xlane.f32.xlu0 %v260_v10  ;;  %347 = vmatpush.msra.mxu0 %v289_v19  ;;  %p697_p6 = scmp.ne.s32.totalorder %s695_s8, %s696_s28  ;;  %p702_p1 = scmp.lt.s32.totalorder %s700_s7, %s696_s28 }
  0x35   : > { %637 = vset.pattern.permute.xlu1 %v420_v62  ;;  %636 = vset.pattern.permute.xlu0 %v414_v63 }
  0x36   : > { %p698_p9 = pnand %p697_p6, %p832_p11  ;;  %p703_p3 = por %p702_p1, %p701_p0 }
  0x38   : > { %p699_p13 = pneg %p698_p9 }
  0x3a   : > { %p704_p4 = pnand %p703_p3, %p699_p13 }
  0x3b   : > { %279 = vadd.xlane.f32.xlu1 %v278_v14 }
  0x3c   : > { %267 = vadd.xlane.f32.xlu0 %v266_v15 }
  0x9e   : > { %v271_v20 = vpop.xlane.xlu1 %270  ;;  %v265_v22 = vpop.xlane.xlu2 %264 }
  0x9f   : > { %v259_v21 = vpop.xlane.xlu0 %258  ;;  %v285_v31 = vmul.f32 0.015625, %v271_v20  ;;  %v283_v37 = vmul.f32 0.015625, %v265_v22 }
  0xa0   : > { %v281_v32 = vmul.f32 0.015625, %v259_v21 }
  0xa1   : > { %v320_v38 = vperm.slane %v285_v31, %v306_v24  ;;  %v313_v48 = vperm.slane %v283_v37, %v312_v36 }
  0xa2   : > { %v307_v39 = vperm.slane %v281_v32, %v306_v24 }
  0xa6   : > { %v274_v25 = vpop.xlane.xlu1 %273  ;;  %v277_v30 = vpop.xlane.xlu2 %276 }
  0xa7   : > { %v262_v26 = vpop.xlane.xlu0 %261  ;;  %v286_v28 = vmul.f32 0.015625, %v274_v25  ;;  %v287_v33 = vmul.f32 0.015625, %v277_v30  ;;  %v426_v25 = vadd.s32 24, %v407_v61 }
  0xa8   : > { %v282_v29 = vmul.f32 0.015625, %v262_v26 }
  0xa9   : > { %v321_v34 = vperm.slane %v286_v28, %v308_v27  ;;  %v323_v41 = vperm.slane %v287_v33, %v312_v36 }
  0xaa   : > { %v309_v35 = vperm.slane %v282_v29, %v308_v27 }
  0xab   : > { %v322_v44 = vsel %vm310_vm1, %v321_v34, %v320_v38 }
  0xac   : > { %v311_v45 = vsel %vm310_vm1, %v309_v35, %v307_v39  ;;  %v324_v52 = vsel %vm314_vm2, %v323_v41, %v322_v44 }
  0xad   : > { %v315_v51 = vsel %vm314_vm2, %v313_v48, %v311_v45 }
  0xae   : > { %v280_v42 = vpop.xlane.xlu1 %279 }
  0xaf   : > { %v268_v43 = vpop.xlane.xlu0 %267  ;;  %v288_v46 = vmul.f32 0.015625, %v280_v42 }
  0xb0   : > { %v284_v47 = vmul.f32 0.015625, %v268_v43 }
  0xb1   : > { %v325_v49 = vperm.slane %v288_v46, %v316_v40 }
  0xb2   : > { %v317_v50 = vperm.slane %v284_v47, %v316_v40 }
  0xb3   : > { %v326_v54 = vsel %vm318_vm3, %v325_v49, %v324_v52 }
  0xb4   : > { %v319_v53 = vsel %vm318_vm3, %v317_v50, %v315_v51 }
  0xb5   : > { %v328_v55 = vsel %vm327_vm4, %v326_v54, %v319_v53 }
  0xb6   : > { %571 = vmatmul.msk.f32.vlgmr.msra.gmra.mxu0 %vm329_vm5, %v328_v55 }
 0x133   : > { %v349_v58 = vpop.f32.mrf.mxu0 }
 0x134   : > { %v350_v59 = vadd.f32 %v644_v57, %v349_v58 }
 0x136   : > { %v352_v60 = vmax.f32 %v350_v59, 0.0 }
 0x138   : > { %573 = vmatmul.msk.f32.vlgmr.msra.gmra.mxu1 %vm358_vm7, %v352_v60 }
 0x1b5   : > { %v383_v4 = vpop.f32.mrf.mxu1 }
 0x1b6   : > { %v384_v5 = vadd.f32 %v645_v3, %v383_v4 }
 0x1b8   : > { %v574_v9 = vmul.f32 -1.442695, %v384_v5 }
 0x1ba   : > { %646 = vpow2.f32 %v574_v9 }
 0x1c0   : > { %v647_v10 = vpop.eup %646 }
 0x1c1   : > { %v389_v11 = vadd.f32 1.0, %v647_v10 }
 0x1c3   : > { %648 = vrcp.f32 %v389_v11  ;;  %v401_v17 = vand.u32 2147483648, %v389_v11  ;;  %v399_v19 = vand.u32 2147483647, %v389_v11  ;;  %vm395_vm9 = vweird.f32 %v389_v11 }
 0x1c5   : > { %v402_v21 = vor.u32 1.1754944e-38, %v401_v17  ;;  %vm400_vm11 = vcmp.eq.f32.partialorder %v399_v19, 8.507059e+37 }
 0x1c9   : > { %v649_v14 = vpop.eup %648 }
 0x1ca   : > { %v391_v15 = vmul.f32 %v649_v14, %v389_v11  ;;  %vm396_vm8 = vweird.f32 %v649_v14 }
 0x1cb   : > { %vm397_vm10 = vmor %vm395_vm9, %vm396_vm8 }
 0x1cc   : > { %v392_v16 = vsub.f32 1.0, %v391_v15 }
 0x1ce   : > { %v393_v18 = vmul.f32 %v649_v14, %v392_v16 }
 0x1d0   : > { %v394_v20 = vadd.f32 %v649_v14, %v393_v18 }
 0x1d2   : > { %v398_v22 = vsel %vm397_vm10, %v649_v14, %v394_v20 }
 0x1d3   : > { %v403_v23 = vsel %vm400_vm11, %v402_v21, %v398_v22 }
 0x1d4   : > { %v405_v24 = vperm.slane %v403_v23, 0  ;;  %v430_v26 = vperm.slane %v403_v23, 1 }
 0x1d6   : > { %422 = vperm.xlu1 %637, %v405_v24   ;;  %416 = vperm.xlu0 %636, %v405_v24  }
 0x1d7   : > { %410 = vperm.xlu2 %635, %v405_v24  }
 0x1de   : > { %640 = vset.pattern.permute.xlu1 %v414_v63  ;;  %643 = vset.pattern.permute.xlu0 %v426_v25 }
 0x1df   : > { %638 = vset.pattern.permute.xlu2 %v426_v25 }
 0x1e6   : > { %441 = vperm.xlu1 %640, %v430_v26  }
 0x1e7   : > { %428 = vperm.xlu2 %638, %v405_v24  }
 0x1ee   : > { %642 = vset.pattern.permute.xlu1 %v426_v25 }
 0x1ef   : > { %639 = vset.pattern.permute.xlu2 %v407_v61 }
 0x1f6   : > { %453 = vperm.xlu1 %642, %v430_v26  }
 0x1f7   : > { %435 = vperm.xlu2 %639, %v430_v26  }
 0x1ff   : > { %641 = vset.pattern.permute.xlu2 %v420_v62 }
 0x207   : > { %447 = vperm.xlu2 %641, %v430_v26  }
 0x231   : > { %v411_v27 = vpop.permute.xlu2 %410 }
 0x232   : > { %v455_v28 = vmul.f32 %v411_v27, %v880_v1 }
 0x234   : > { %463 = vst.msk [vmem:[%s245_s29] sm:$0xff] %vm256_vm0, %v455_v28 }
 0x241   : > { %v429_v29 = vpop.permute.xlu2 %428 }
 0x242   : > { %v458_v30 = vmul.f32 %v429_v29, %v904_v13 }
 0x244   : > { %466 = vst.msk [vmem:[%s245_s29 + $0x18] sm:$0xff] %vm256_vm0, %v458_v30 }
 0x248   : > { %v423_v31 = vpop.permute.xlu1 %422  ;;  %v417_v32 = vpop.permute.xlu0 %416 }
 0x249   : > { %v457_v33 = vmul.f32 %v423_v31, %v882_v2  ;;  %v456_v34 = vmul.f32 %v417_v32, %v892_v7 }
 0x24b   : > { %465 = vst.msk [vmem:[%s245_s29 + $0x10] sm:$0xff] %vm256_vm0, %v457_v33 }
 0x24c   : > { %464 = vst.msk [vmem:[%s245_s29 + $0x8] sm:$0xff] %vm256_vm0, %v456_v34 }
 0x251   : > { %v436_v1 = vpop.permute.xlu2 %435 }
 0x252   : > { %v459_v35 = vmul.f32 %v436_v1, %v878_v0 }
 0x254   : > { %467 = vst.msk [vmem:[%s245_s29 + $0x20] sm:$0xff] %vm256_vm0, %v459_v35 }
 0x258   : > { %v442_v36 = vpop.permute.xlu1 %441 }
 0x259   : > { %v460_v13 = vmul.f32 %v442_v36, %v890_v6 }
 0x25b   : > { %468 = vst.msk [vmem:[%s245_s29 + $0x28] sm:$0xff] %vm256_vm0, %v460_v13 }
 0x261   : > { %v448_v37 = vpop.permute.xlu2 %447 }
 0x262   : > { %v461_v2 = vmul.f32 %v448_v37, %v894_v8 }
 0x264   : > { %469 = vst.msk [vmem:[%s245_s29 + $0x30] sm:$0xff] %vm256_vm0, %v461_v2 }
 0x268   : > { %v454_v0 = vpop.permute.xlu1 %453 }
 0x269   : > { %v462_v6 = vmul.f32 %v454_v0, %v902_v12 }
 0x26b   : > { %470 = vst.msk [vmem:[%s245_s29 + $0x38] sm:$0xff] %vm256_vm0, %v462_v6 }
 0x26c   : > { %707 = shalt.err (!%p704_p4)
}
 0x26d   : > { %s750_s12 = smov 128   ;;  %s751_s25 = smov 8  }
 0x26e   : > { %587 = dma.vmem_to_hbm [thread:$0]  (%p832_p11), %s486_s17, 1024, %s488_s26, %s472_s22, %s750_s12, %s750_s12, %s751_s25  }
 0x26f PF: > { %s502_s29 = sand.u32 1, %s734_s18   ;;  %p993_p7 = scmp.ge.s32.totalorder %s746_s21, 2 }
 0x270   : > { %s503_s14 = scalar_lea.sflag [#allocation4], %s502_s29 }
 0x271   : > { %p594_p5 = pnand %p993_p7, %p836_p12 }
 0x273   : > { %p595_p8 = pneg %p594_p5 }
 0x275   : > { %729 = dma.done.wait (%p595_p8), %s503_s14, 1024  }
 0x276   : > { %731 = vsyncadd (%p595_p8), %s503_s14, 4294966272  ;;  %p18_p10 = scmp.ge.s32.totalorder %s807_s24, 4   ;;  %s994_s18 = smov %s738_s19 }
 0x277   : > { %s995_s19 = smov %s742_s20  ;;  %s996_s20 = smov %s819_s27 }
 0x278   : > { %s997_s21 = smov %s807_s24  ;;  %20 = sbr.rel (!%p18_p10) target bundleno = 5 (0x5), region = 85 }
 0x27d   :  { %509 = vsyncpa [#allocation3], 1 }
 0x27e   :  { %511 = vsyncpa [#allocation3 + $0x1], 1 }
 0x27f   :  { %512 = vsyncpa [#allocation4], 1 }
 0x280   :  { %514 = vsyncpa [#allocation4 + $0x1], 1 }

</bundles_post_ra>
